<compile_context>
chip_gen: v6e
topology: v6e:2x2x1
jax: 0.10.0
libtpu: 0.0.40
codegen_flags: <defaults>
</compile_context>

<pallas_src>
import jax
import jax.numpy as jnp
from jax.experimental import pallas as pl
from jax.experimental.pallas import tpu as pltpu


def _conv_bn_relu_kernel(p_ref, w_ref, b_ref, o_ref):
    # p_ref: (9*Cin, H*W)   im2col patches for one batch element
    # w_ref: (Cout, 9*Cin)  conv weights with BN scale folded in
    # b_ref: (Cout, 1)      folded bias (conv bias + BN shift)
    # o_ref: (Cout, H*W)    lane-dense output tile
    acc = jnp.dot(w_ref[...], p_ref[...], preferred_element_type=jnp.float32)
    y = jnp.maximum(acc + b_ref[...], 0.0)  # bias broadcast over lanes + ReLU
    o_ref[...] = y.astype(o_ref.dtype)


def single_conv_forward(x_nchw, w_hwio, conv_bias, gamma, beta,
                        running_mean, running_var, eps=1e-5):
    """Conv2d(3x3, pad=1) + BatchNorm2d (inference, folded) + ReLU. NCHW in/out."""
    N, Cin, H, Wd = x_nchw.shape
    Cout = w_hwio.shape[-1]
    HW = H * Wd
    K = 9 * Cin

    # ---- BN folding (inference mode): y = scale*(conv(x)+b - mean) + beta ----
    scale = gamma / jnp.sqrt(running_var + eps)                      # (Cout,)
    w_folded = w_hwio * scale[None, None, None, :]                   # (3,3,Cin,Cout)
    w_mat = w_folded.reshape(K, Cout).T.astype(jnp.float32)          # (Cout, 9*Cin)
    bias = (conv_bias - running_mean) * scale + beta                 # (Cout,)
    bias2d = bias.reshape(Cout, 1).astype(jnp.float32)

    # ---- im2col in channel-first layout (no NCHW<->NHWC transposes) ----
    # XLA fuses pad + 9 slices + stack into one pass producing `patches`.
    x_pad = jnp.pad(x_nchw, ((0, 0), (0, 0), (1, 1), (1, 1)))
    taps = [x_pad[:, :, kh:kh + H, kw:kw + Wd]
            for kh in range(3) for kw in range(3)]                   # 9 x (N,Cin,H,W)
    patches = jnp.stack(taps, axis=1).reshape(N, K, HW)              # (N, 9*Cin, H*W)

    out = pl.pallas_call(
        _conv_bn_relu_kernel,
        out_shape=jax.ShapeDtypeStruct((N, Cout, HW), x_nchw.dtype),
        grid_spec=pltpu.PrefetchScalarGridSpec(
            num_scalar_prefetch=0,
            grid=(N,),
            in_specs=[
                pl.BlockSpec((None, K, HW), lambda n: (n, 0, 0)),
                pl.BlockSpec((Cout, K), lambda n: (0, 0)),
                pl.BlockSpec((Cout, 1), lambda n: (0, 0)),
            ],
            out_specs=pl.BlockSpec((None, Cout, HW), lambda n: (n, 0, 0)),
        ),
        compiler_params=pltpu.CompilerParams(
            dimension_semantics=("parallel",),   # shards over the 2 TCs on v7x
        ),
    )(patches, w_mat, bias2d)

    return out.reshape(N, Cout, H, Wd)           # already NCHW; reshape is free


if __name__ == "__main__":
    # Small shapes consistent with the module: N=2, in_ch=4, out_ch=8, 16x16
    N, Cin, Cout, H, Wd = 2, 4, 8, 16, 16

    key = jax.random.PRNGKey(0)
    k_x, k_w, k_b, k_g, k_be, k_rm, k_rv = jax.random.split(key, 7)

    x = jax.random.normal(k_x, (N, Cin, H, Wd), dtype=jnp.float32)

    # Conv2d(in_ch, out_ch, 3) params — stored HWIO
    w_hwio = jax.random.normal(k_w, (3, 3, Cin, Cout), dtype=jnp.float32) * 0.1
    conv_bias = jax.random.normal(k_b, (Cout,), dtype=jnp.float32) * 0.1

    # BatchNorm2d(out_ch) params (deterministic, non-trivial)
    gamma = 1.0 + 0.1 * jax.random.normal(k_g, (Cout,), dtype=jnp.float32)
    beta = 0.1 * jax.random.normal(k_be, (Cout,), dtype=jnp.float32)
    running_mean = 0.05 * jax.random.normal(k_rm, (Cout,), dtype=jnp.float32)
    running_var = 1.0 + 0.1 * jax.random.uniform(k_rv, (Cout,), dtype=jnp.float32)

    out = single_conv_forward(x, w_hwio, conv_bias, gamma, beta,
                              running_mean, running_var)
    jax.block_until_ready(out)
    assert out.shape == (N, Cout, H, Wd)
    assert bool(jnp.all(out >= 0.0))  # ReLU post-condition

    # Plain-JAX reference (conv + BN(inference) + ReLU) for numerical check.
    ref_conv = jax.lax.conv_general_dilated(
        x, w_hwio, window_strides=(1, 1), padding="SAME",
        dimension_numbers=("NCHW", "HWIO", "NCHW"),
    ) + conv_bias.reshape(1, Cout, 1, 1)
    scale_ref = (gamma / jnp.sqrt(running_var + 1e-5)).reshape(1, Cout, 1, 1)
    ref = jnp.maximum(
        (ref_conv - running_mean.reshape(1, Cout, 1, 1)) * scale_ref
        + beta.reshape(1, Cout, 1, 1),
        0.0,
    )
    assert bool(jnp.allclose(out, ref, atol=2e-4, rtol=2e-4))

    print("KERNEL_OK")
</pallas_src>

<mosaic_0001>
module attributes {stable_mosaic.version = 11 : i64} {
  func.func @_conv_bn_relu_kernel(%arg0: i32, %arg1: memref<1x36x256xf32, #tpu.memory_space<vmem>>, %arg2: memref<8x36xf32, #tpu.memory_space<vmem>>, %arg3: memref<8x1xf32, #tpu.memory_space<vmem>>, %arg4: memref<1x8x256xf32, #tpu.memory_space<vmem>>) attributes {dimension_semantics = [#tpu.dimension_semantics<parallel>], iteration_bounds = array<i64: 2>, scalar_prefetch = 0 : i64, scratch_operands = 0 : i64, tpu.core_type = #tpu.core_type<tc>, window_params = [{transform_indices = @transform_0, window_bounds = array<i64: 1, 36, 256>}, {pipeline_mode = #tpu.pipeline_mode<synchronous>, transform_indices = @transform_1, window_bounds = array<i64: 8, 36>}, {pipeline_mode = #tpu.pipeline_mode<synchronous>, transform_indices = @transform_2, window_bounds = array<i64: 8, 1>}, {transform_indices = @transform_3, window_bounds = array<i64: 1, 8, 256>}]} {
    %c0 = arith.constant 0 : index
    %c0_0 = arith.constant 0 : index
    %0 = vector.load %arg2[%c0, %c0_0] : memref<8x36xf32, #tpu.memory_space<vmem>>, vector<8x36xf32>
    %c0_1 = arith.constant 0 : index
    %c0_2 = arith.constant 0 : index
    %c0_3 = arith.constant 0 : index
    %1 = vector.load %arg1[%c0_1, %c0_2, %c0_3] : memref<1x36x256xf32, #tpu.memory_space<vmem>>, vector<1x36x256xf32>
    %2 = vector.shape_cast %1 : vector<1x36x256xf32> to vector<36x256xf32>
    %cst = arith.constant dense<0.000000e+00> : vector<8x256xf32>
    %3 = tpu.matmul %0, %2, %cst {dimension_numbers = #tpu.dot_dimension_numbers<[1], [0], [0], [1], [0, 0, 1, 1], [], []>} : vector<8x36xf32>, vector<36x256xf32>, vector<8x256xf32> -> vector<8x256xf32>
    %c0_4 = arith.constant 0 : index
    %c0_5 = arith.constant 0 : index
    %4 = vector.load %arg3[%c0_4, %c0_5] : memref<8x1xf32, #tpu.memory_space<vmem>>, vector<8x1xf32>
    %5 = vector.broadcast %4 : vector<8x1xf32> to vector<8x256xf32>
    %6 = arith.addf %3, %5 : vector<8x256xf32>
    %cst_6 = arith.constant 0.000000e+00 : f32
    %7 = vector.broadcast %cst_6 : f32 to vector<8x256xf32>
    %8 = arith.maximumf %6, %7 : vector<8x256xf32>
    %c0_7 = arith.constant 0 : index
    %c0_8 = arith.constant 0 : index
    %c0_9 = arith.constant 0 : index
    %9 = vector.load %arg4[%c0_7, %c0_8, %c0_9] : memref<1x8x256xf32, #tpu.memory_space<vmem>>, vector<1x8x256xf32>
    %10 = vector.shape_cast %9 : vector<1x8x256xf32> to vector<8x256xf32>
    %11 = vector.shape_cast %8 : vector<8x256xf32> to vector<1x8x256xf32>
    tpu.vector_store %arg4[%c0_7, %c0_8, %c0_9], %11 {strides = array<i32>} : memref<1x8x256xf32, #tpu.memory_space<vmem>>, vector<1x8x256xf32>,
    return
  }
  func.func @transform_0(%arg0: i32) -> (i32, i32, i32) {
    %c0_i32 = arith.constant 0 : i32
    %c0_i32_0 = arith.constant 0 : i32
    %c0_i32_1 = arith.constant 0 : i32
    return %arg0, %c0_i32, %c0_i32_0 : i32, i32, i32
  }
  func.func @transform_1(%arg0: i32) -> (i32, i32) {
    %c0_i32 = arith.constant 0 : i32
    %c0_i32_0 = arith.constant 0 : i32
    %c0_i32_1 = arith.constant 0 : i32
    return %c0_i32, %c0_i32_0 : i32, i32
  }
  func.func @transform_2(%arg0: i32) -> (i32, i32) {
    %c0_i32 = arith.constant 0 : i32
    %c0_i32_0 = arith.constant 0 : i32
    %c0_i32_1 = arith.constant 0 : i32
    return %c0_i32, %c0_i32_0 : i32, i32
  }
  func.func @transform_3(%arg0: i32) -> (i32, i32, i32) {
    %c0_i32 = arith.constant 0 : i32
    %c0_i32_0 = arith.constant 0 : i32
    %c0_i32_1 = arith.constant 0 : i32
    return %arg0, %c0_i32, %c0_i32_0 : i32, i32, i32
  }
}

</mosaic_0001>

<bundles_post_ra>
// kernel: tpu_custom_call.1
= control target key start
LH: loop header
LB: loop body
LE: loop exit
PB: predicated region body
PF: predicated region fallthrough
CT: control target
= control target key end

     0   :  { %8 = vsyncpa [#allocation3], 0  ;;  %s582_s0 = inlined_call_operand.vmem [shape: f32[2,36,256], index: 0, kind: input, shape index: {}]   ;;  %s583_s1 = inlined_call_operand.vmem [shape: f32[8,36], index: 1, kind: input, shape index: {}]   ;;  %s584_s2 = inlined_call_operand.vmem [shape: f32[8,1], index: 2, kind: input, shape index: {}]   ;;  %s585_s3 = inlined_call_operand.hbm [shape: f32[2,8,256], index: 3, kind: output, shape index: {}]  }
   0x1   :  { %10 = vsyncpa [#allocation3 + $0x1], 0  ;;  %s489_s12 = smov 0   ;;  %s491_s13 = smov 0  }
   0x2   :  { %s493_s14 = smov 0   ;;  %s495_s15 = smov 0  }
   0x3 LB: > { %s510_s16 = sadd.s32 4294967295, %s464_s15   ;;  %s346_s17 = sadd.s32 4294967294, %s464_s15   ;;  %s464_s15 = sphi %s495_s15, %s591_s15   ;;  %s460_s14 = sphi %s493_s14, %s590_s14   ;;  %s456_s13 = sphi %s491_s13, %s589_s13   ;;  %s452_s12 = sphi %s489_s12, %s588_s12  }
   0x4   : > { %s514_s18 = sadd.s32 1, %s464_s15   ;;  %s91_s19 = sadd.s32 1, %s460_s14 }
   0x5   : > { %s88_s20 = ssub.s32 %s464_s15, %s514_s18  ;;  %p101_p0 = scmp.ne.s32.totalorder %s460_s14, %s456_s13 }
   0x6   : > { %p89_p1 = scmp.eq.s32.totalorder %s88_s20, 0  ;;  %p102_p2 = scmp.eq.s32.totalorder %s510_s16, 1 }
   0x7   : > { %p107_p3 = scmp.ne.s32.totalorder %s456_s13, %s452_s12  ;;  %p108_p4 = scmp.eq.s32.totalorder %s346_s17, 1 }
   0x8   : > { %s525_s21 = scalar_select %p89_p1, %s460_s14, %s91_s19  }
   0x9   : > { %p527_p5 = por %p102_p2, %p101_p0  ;;  %p531_p6 = por %p108_p4, %p107_p3 }
   0xa   : > { %p349_p7 = scmp.ge.s32.totalorder %s464_s15, 1  ;;  %p140_p8 = scmp.lt.s32.totalorder %s464_s15, 3 }
   0xc   : > { %p141_p9 = pnand %p349_p7, %p140_p8 }
   0xd   : > { %p164_p10 = scmp.lt.s32.totalorder (!%p141_p9), %s510_s16, 1  ;;  %s161_s6 = sand.u32 (!%p141_p9), 1, %s456_s13  }
   0xe   : > { %144 = sbr.rel (%p141_p9) target bundleno = 247 (0xf7), region = 32  ;;  %s350_s7 = sshll.u32 (!%p141_p9), %s161_s6, 4 }
   0xf   : > { %s360_s8 = sshll.u32 (!%p141_p9), %s510_s16, 8  ;;  %s163_s9 = scalar_lea.vmem (!%p141_p9), [#allocation2], %s350_s7 }
  0x10   : > { %s287_s10 = sshll.u32 (!%p141_p9), %s163_s9, 4  ;;  %s285_s19 = scalar_lea.hbm (!%p141_p9), %s585_s3, %s360_s8  ;;  %s288_s10 = int_to_ptr.vmem [resolvable:$true] %s287_s10 }
  0x11   : > { %s273_s20 = scalar_lea.sflag (!%p141_p9), [#allocation3], %s161_s6  ;;  %s404_s24 = scalar_lea.vmem (!%p141_p9), %s288_s10, 256 }
  0x12   : > { %p405_p11 = scmp.ne.s32.totalorder (!%p141_p9), %s288_s10, %s404_s24  ;;  %s468_s25 = smov (!%p141_p9), [#allocation2]  }
  0x13   : > { %v466_v0 = vmov 0.0   ;;  %v467_v1 = vmov 0   ;;  %v180_v2 = vld [vmem:[%s584_s2] sm:$0xff]  ;;  %s165_s26 = scalar_select %p164_p10, %s510_s16, 1  ;;  %vm190_vm0 = vcmask 1043456   ;;  %vm186_vm1 = vcmask 293888  }
  0x14   : > { %261 = vmatprep.mubr.f32.mxu0 %v466_v0  ;;  %403 = vset.pattern.permute.xlu0 %v467_v1  ;;  %v169_v13 = vld [vmem:[%s583_s1] sm:$0xff]  ;;  %p406_p12 = pnand %p405_p11, %p527_p5  ;;  %s408_s16 = sshll.u32 %s468_s25, 4  ;;  %s409_s16 = int_to_ptr.vmem [resolvable:$false] %s408_s16 }
  0x15   : > { %183 = vperm.xlu0 %403, %v180_v2   ;;  %s361_s27 = smul.u32 80, %s165_s26  ;;  %s410_s26 = scalar_lea.vmem %s409_s16, 512 }
  0x16   : > { %p407_p13 = pneg %p406_p12  ;;  %p411_p0 = scmp.lt.s32.totalorder %s288_s10, %s409_s16 }
  0x17   : > { %s168_s30 = scalar_lea.vmem %s582_s0, %s361_s27  ;;  %p412_p1 = scmp.lt.s32.totalorder %s410_s26, %s404_s24 }
  0x18   : > { %v179_v3 = vld [vmem:[%s168_s30 + $0x48] sm:$0xf]  ;;  %v178_v4 = vld [vmem:[%s168_s30 + $0x40] sm:$0xf]  ;;  %v177_v5 = vld [vmem:[%s168_s30 + $0x38] sm:$0xff] }
  0x19   : > { %352 = vmatprep.subr.msk.mxu0 %vm190_vm0, %v179_v3  ;;  %v176_v6 = vld [vmem:[%s168_s30 + $0x30] sm:$0xff]  ;;  %v175_v7 = vld [vmem:[%s168_s30 + $0x28] sm:$0xff]  ;;  %v174_v8 = vld [vmem:[%s168_s30 + $0x20] sm:$0xff]  ;;  %p413_p2 = por %p412_p1, %p411_p0 }
  0x1a   : > { %353 = vmatpush1.msk.msra.mxu0 %vm190_vm0, %v178_v4  ;;  %v173_v9 = vld [vmem:[%s168_s30 + $0x18] sm:$0xff]  ;;  %v172_v10 = vld [vmem:[%s168_s30 + $0x10] sm:$0xff]  ;;  %v171_v11 = vld [vmem:[%s168_s30 + $0x8] sm:$0xff] }
  0x1b   : > { %221 = vmatprep.subr.mxu0 %v177_v5  ;;  %v170_v12 = vld [vmem:[%s168_s30] sm:$0xff]  ;;  %p414_p3 = pnand %p413_p2, %p407_p13 }
  0x1c   : > { %222 = vmatpush1.msra.mxu0 %v176_v6 }
  0x1d   : > { %223 = vmatprep.subr.mxu0 %v175_v7 }
  0x1e   : > { %224 = vmatpush1.msra.mxu0 %v174_v8 }
  0x1f   : > { %225 = vmatprep.subr.mxu0 %v173_v9 }
  0x20   : > { %226 = vmatpush1.msra.mxu0 %v172_v10 }
  0x21   : > { %227 = vmatprep.subr.mxu0 %v171_v11 }
  0x22   : > { %228 = vmatpush1.msra.mxu0 %v170_v12 }
  0x23   : > { %354 = vmatmul.mubr.msk.f32.vlgmr.msra.gmra.mxu0 %vm186_vm1, %v169_v13 }
  0x90   : > { %v184_v14 = vpop.permute.xlu0 %183 }
  0xe3   : > { %v263_v15 = vpop.f32.mrf.mxu0 }
  0xe4   : > { %v264_v16 = vadd.f32 %v263_v15, %v184_v14 }
  0xe5   : > { %v265_v17 = vpop.f32.mrf.mxu0 }
  0xe6   : > { %v268_v18 = vmax.f32 %v264_v16, 0.0  ;;  %v266_v19 = vadd.f32 %v265_v17, %v184_v14 }
  0xe8   : > { %270 = vst [vmem:[%s163_s9] sm:$0xff] %v268_v18  ;;  %v269_v20 = vmax.f32 %v266_v19, 0.0 }
  0xea   : > { %271 = vst [vmem:[%s163_s9 + $0x8] sm:$0xff] %v269_v20 }
  0xeb   : > { %417 = shalt.err (!%p414_p3)
}
  0xec   : > { %s418_s27 = scalar_lea.hbm %s285_s19, 256  ;;  %s422_s30 = scalar_lea.hbm %s585_s3, 512 }
  0xed   : > { %p419_p4 = scmp.ne.s32.totalorder %s285_s19, %s418_s27  ;;  %p423_p9 = scmp.lt.s32.totalorder %s285_s19, %s585_s3 }
  0xee   : > { %p424_p10 = scmp.lt.s32.totalorder %s422_s30, %s418_s27 }
  0xef   : > { %p420_p7 = pnand %p419_p4, %p527_p5 }
  0xf0   : > { %p425_p11 = por %p424_p10, %p423_p9 }
  0xf1   : > { %p421_p8 = pneg %p420_p7 }
  0xf3   : > { %p426_p12 = pnand %p425_p11, %p421_p8 }
  0xf5   : > { %429 = shalt.err (!%p426_p12)
}
  0xf6   : > { %362 = dma.vmem_to_hbm [thread:$0]  (%p527_p5), %s288_s10, 256, %s285_s19, %s273_s20  }
  0xf7 PF: > { %p368_p13 = scmp.ge.s32.totalorder %s464_s15, 2  ;;  %s299_s6 = sand.u32 1, %s452_s12  }
  0xf8   : > { %s300_s7 = scalar_lea.sflag [#allocation3], %s299_s6 }
  0xf9   : > { %p365_p0 = pnand %p368_p13, %p531_p6 }
  0xfb   : > { %p366_p1 = pneg %p365_p0 }
  0xfd   : > { %447 = dma.done.wait (%p366_p1), %s300_s7, 256  }
  0xfe   : > { %449 = vsyncadd (%p366_p1), %s300_s7, 4294967040  ;;  %p13_p2 = scmp.ge.s32.totalorder %s514_s18, 4   ;;  %s588_s12 = smov %s456_s13 }
  0xff   : > { %s589_s13 = smov %s460_s14  ;;  %s590_s14 = smov %s525_s21 }
 0x100   : > { %s591_s15 = smov %s514_s18  ;;  %15 = sbr.rel (!%p13_p2) target bundleno = 3 (0x3), region = 67 }
 0x105   :  { %305 = vsyncpa [#allocation3], 1 }
 0x106   :  { %307 = vsyncpa [#allocation3 + $0x1], 1 }

</bundles_post_ra>
